<compile_context>
chip_gen: v5e
topology: v5e:2x2
jax: 0.10.0
libtpu: 0.0.40
codegen_flags: <defaults>
</compile_context>

<pallas_src>
import jax
import jax.numpy as jnp
import numpy as np
from jax import lax
from jax.experimental import pallas as pl
from jax.experimental.pallas import tpu as pltpu

B = 8        # batch
W_IN = 4     # input width: img becomes (B, 1, 1, 4) after the two unsqueezes
C1, C4 = 6, 16
FC1, FC2, FC3 = 120, 84, 10

# ---- packed parameter slab layout (rows, 128 lanes, f32, zero padded) -------
PK_LANES = 128
B1_ROW = 0                      # conv1 bias        (1, 6)
B4_ROW = 1                      # conv4 bias        (1, 16)
BF1_ROW = 2                     # fc1 bias          (1, 120)
BF2_ROW = 3                     # fc2 bias          (1, 84)
BF3_ROW = 4                     # fc3 bias          (1, 10)
W4_ROW = 8                      # (w4[..0]+w4[..1]).T            (6, 16)
WF1_ROW = 16                    # (wf1[:,0::2]+wf1[:,1::2]).T    (16, 120)
WF2_ROW = 32                    # wf2.T                          (120, 84)
WF3_ROW = 152                   # wf3.T                          (84, 10)
PK_ROWS = 240                   # 236 used, padded to a multiple of 8


def lenet2_kernel(x_ref, pk_ref, out_ref):
    f32 = jnp.float32
    b = x_ref.shape[0]           # batch taken from x (x's data is structurally
                                 # unused: maxpool drops the only data row)

    # static slices out of the packed parameter slab (single DMA'd input)
    b1 = pk_ref[B1_ROW:B1_ROW + 1, :C1]             # (1, 6)
    b4 = pk_ref[B4_ROW:B4_ROW + 1, :C4]             # (1, 16)
    bf1 = pk_ref[BF1_ROW:BF1_ROW + 1, :FC1]         # (1, 120)
    bf2 = pk_ref[BF2_ROW:BF2_ROW + 1, :FC2]         # (1, 84)
    bf3 = pk_ref[BF3_ROW:BF3_ROW + 1, :FC3]         # (1, 10)
    w4s = pk_ref[W4_ROW:W4_ROW + C1, :C4]           # (6, 16)   pre-summed taps
    wf1s = pk_ref[WF1_ROW:WF1_ROW + C4, :FC1]       # (16, 120) pre-summed even+odd
    wf2t = pk_ref[WF2_ROW:WF2_ROW + FC1, :FC2]      # (120, 84)
    wf3t = pk_ref[WF3_ROW:WF3_ROW + FC2, :FC3]      # (84, 10)

    # conv1 + sigmoid + maxpool: pooled feature3 equals sigmoid(conv1 bias),
    # identical over batch, H' and W' (maxpool only sees the padding rows).
    pooled = jax.nn.sigmoid(jnp.broadcast_to(b1, (b, C1)))                 # (B, 6)

    # conv4 = Conv2d(6,16,(1,2)) on a width-constant map, + sigmoid.
    s5 = jax.nn.sigmoid(jnp.dot(pooled, w4s, preferred_element_type=f32) + b4)   # (B, 16)

    # fc: flatten (B,16,2,1)->(B,32) has identical h=0/h=1 columns -> one dot.
    h1 = jax.nn.sigmoid(jnp.dot(s5, wf1s, preferred_element_type=f32) + bf1)     # (B, 120)
    h2 = jax.nn.sigmoid(jnp.dot(h1, wf2t, preferred_element_type=f32) + bf2)     # (B, 84)
    out = jnp.dot(h2, wf3t, preferred_element_type=f32) + bf3                    # (B, 10)
    out_ref[...] = out.astype(out_ref.dtype)


def pack_params(params):
    """One-time host-side parameter folding into a single [240,128] f32 slab."""
    (_w1, b1, w4, b4, wf1, bf1, wf2, bf2, wf3, bf3) = [
        np.asarray(p, np.float32) for p in params
    ]
    pk = np.zeros((PK_ROWS, PK_LANES), np.float32)
    pk[B1_ROW, :C1] = b1
    pk[B4_ROW, :C4] = b4
    pk[BF1_ROW, :FC1] = bf1
    pk[BF2_ROW, :FC2] = bf2
    pk[BF3_ROW, :FC3] = bf3
    pk[W4_ROW:W4_ROW + C1, :C4] = (w4[:, :, 0, 0] + w4[:, :, 0, 1]).T           # (6, 16)
    pk[WF1_ROW:WF1_ROW + C4, :FC1] = (wf1[:, 0::2] + wf1[:, 1::2]).T            # (16, 120)
    pk[WF2_ROW:WF2_ROW + FC1, :FC2] = wf2.T                                     # (120, 84)
    pk[WF3_ROW:WF3_ROW + FC2, :FC3] = wf3.T                                     # (84, 10)
    return jnp.asarray(pk)


def lenet2_forward(x, packed):
    """Forward pass: one pallas_call, two input DMAs (x + packed params)."""
    return pl.pallas_call(
        lenet2_kernel,
        out_shape=jax.ShapeDtypeStruct((x.shape[0], FC3), jnp.float32),
        grid=(1,),
        in_specs=[pl.BlockSpec(x.shape, lambda i: (0, 0)),
                  pl.BlockSpec((PK_ROWS, PK_LANES), lambda i: (0, 0))],
        out_specs=pl.BlockSpec((x.shape[0], FC3), lambda i: (0, 0)),
        compiler_params=pltpu.CompilerParams(dimension_semantics=("arbitrary",)),
    )(x, packed)


def lenet2_reference(x, params):
    """Pure-JAX (XLA) reference matching the PyTorch forward exactly."""
    (w1, b1, w4, b4, wf1, bf1, wf2, bf2, wf3, bf3) = params
    img = x[:, None, None, :]                                       # (B,1,1,4) NCHW
    f1 = lax.conv_general_dilated(img, w1, (1, 1), ((1, 1), (1, 1)),
                                  dimension_numbers=("NCHW", "OIHW", "NCHW"))
    f1 = f1 + b1.reshape(1, C1, 1, 1)
    f2 = jax.nn.sigmoid(f1)
    f3 = lax.reduce_window(f2, -jnp.inf, lax.max,
                           window_dimensions=(1, 1, 1, 2),
                           window_strides=(1, 1, 2, 2), padding="VALID")
    f4 = lax.conv_general_dilated(f3, w4, (1, 1), "VALID",
                                  dimension_numbers=("NCHW", "OIHW", "NCHW"))
    f4 = f4 + b4.reshape(1, C4, 1, 1)
    f5 = jax.nn.sigmoid(f4)
    flat = f5.reshape(x.shape[0], -1)                               # (B, 32)
    h1 = jax.nn.sigmoid(flat @ wf1.T + bf1)
    h2 = jax.nn.sigmoid(h1 @ wf2.T + bf2)
    return h2 @ wf3.T + bf3


if __name__ == "__main__":
    key = jax.random.PRNGKey(0)
    ks = jax.random.split(key, 11)
    s = 0.1
    params = (
        jax.random.normal(ks[0], (C1, 1, 1, 2), jnp.float32) * s,   # conv1 weight
        jax.random.normal(ks[1], (C1,), jnp.float32) * s,           # conv1 bias
        jax.random.normal(ks[2], (C4, C1, 1, 2), jnp.float32) * s,  # conv4 weight
        jax.random.normal(ks[3], (C4,), jnp.float32) * s,           # conv4 bias
        jax.random.normal(ks[4], (FC1, 32), jnp.float32) * s,       # fc1 weight
        jax.random.normal(ks[5], (FC1,), jnp.float32) * s,          # fc1 bias
        jax.random.normal(ks[6], (FC2, FC1), jnp.float32) * s,      # fc2 weight
        jax.random.normal(ks[7], (FC2,), jnp.float32) * s,          # fc2 bias
        jax.random.normal(ks[8], (FC3, FC2), jnp.float32) * s,      # fc3 weight
        jax.random.normal(ks[9], (FC3,), jnp.float32) * s,          # fc3 bias
    )
    x = jax.random.normal(ks[10], (B, W_IN), jnp.float32)

    packed = pack_params(params)      # folded once, reused for every forward call

    out = lenet2_forward(x, packed)
    out = jax.block_until_ready(out)

    ref = lenet2_reference(x, params)
    np.testing.assert_allclose(np.asarray(out), np.asarray(ref),
                               rtol=1e-5, atol=1e-5)
    print("KERNEL_OK")
</pallas_src>

<mosaic_0001>
module attributes {stable_mosaic.version = 11 : i64} {
  func.func @lenet2_kernel(%arg0: i32, %arg1: memref<8x4xf32, #tpu.memory_space<vmem>>, %arg2: memref<240x128xf32, #tpu.memory_space<vmem>>, %arg3: memref<8x10xf32, #tpu.memory_space<vmem>>) attributes {dimension_semantics = [#tpu.dimension_semantics<arbitrary>], iteration_bounds = array<i64: 1>, scalar_prefetch = 0 : i64, scratch_operands = 0 : i64, tpu.core_type = #tpu.core_type<tc>, window_params = [{pipeline_mode = #tpu.pipeline_mode<synchronous>, transform_indices = @transform_0, window_bounds = array<i64: 8, 4>}, {pipeline_mode = #tpu.pipeline_mode<synchronous>, transform_indices = @transform_1, window_bounds = array<i64: 240, 128>}, {pipeline_mode = #tpu.pipeline_mode<synchronous>, transform_indices = @transform_2, window_bounds = array<i64: 8, 10>}]} {
    %c0 = arith.constant 0 : index
    %c0_0 = arith.constant 0 : index
    %0 = vector.load %arg2[%c0, %c0_0] : memref<240x128xf32, #tpu.memory_space<vmem>>, vector<1x6xf32>
    %c1 = arith.constant 1 : index
    %c0_1 = arith.constant 0 : index
    %1 = vector.load %arg2[%c1, %c0_1] : memref<240x128xf32, #tpu.memory_space<vmem>>, vector<1x16xf32>
    %c2 = arith.constant 2 : index
    %c0_2 = arith.constant 0 : index
    %2 = vector.load %arg2[%c2, %c0_2] : memref<240x128xf32, #tpu.memory_space<vmem>>, vector<1x120xf32>
    %c3 = arith.constant 3 : index
    %c0_3 = arith.constant 0 : index
    %3 = vector.load %arg2[%c3, %c0_3] : memref<240x128xf32, #tpu.memory_space<vmem>>, vector<1x84xf32>
    %c4 = arith.constant 4 : index
    %c0_4 = arith.constant 0 : index
    %4 = vector.load %arg2[%c4, %c0_4] : memref<240x128xf32, #tpu.memory_space<vmem>>, vector<1x10xf32>
    %c8 = arith.constant 8 : index
    %c0_5 = arith.constant 0 : index
    %5 = vector.load %arg2[%c8, %c0_5] : memref<240x128xf32, #tpu.memory_space<vmem>>, vector<6x16xf32>
    %c16 = arith.constant 16 : index
    %c0_6 = arith.constant 0 : index
    %6 = vector.load %arg2[%c16, %c0_6] : memref<240x128xf32, #tpu.memory_space<vmem>>, vector<16x120xf32>
    %c32 = arith.constant 32 : index
    %c0_7 = arith.constant 0 : index
    %7 = vector.load %arg2[%c32, %c0_7] : memref<240x128xf32, #tpu.memory_space<vmem>>, vector<120x84xf32>
    %c152 = arith.constant 152 : index
    %c0_8 = arith.constant 0 : index
    %8 = vector.load %arg2[%c152, %c0_8] : memref<240x128xf32, #tpu.memory_space<vmem>>, vector<84x10xf32>
    %9 = vector.shape_cast %0 : vector<1x6xf32> to vector<1x6xf32>
    %10 = vector.broadcast %9 : vector<1x6xf32> to vector<8x6xf32>
    %11 = arith.negf %10 : vector<8x6xf32>
    %12 = math.exp %11 : vector<8x6xf32>
    %cst = arith.constant 1.000000e+00 : f32
    %13 = vector.broadcast %cst : f32 to vector<8x6xf32>
    %14 = arith.addf %13, %12 : vector<8x6xf32>
    %15 = arith.divf %13, %14 : vector<8x6xf32>
    %cst_9 = arith.constant dense<0.000000e+00> : vector<8x16xf32>
    %16 = tpu.matmul %15, %5, %cst_9 {dimension_numbers = #tpu.dot_dimension_numbers<[1], [0], [0], [1], [0, 0, 1, 1], [], []>} : vector<8x6xf32>, vector<6x16xf32>, vector<8x16xf32> -> vector<8x16xf32>
    %17 = vector.broadcast %1 : vector<1x16xf32> to vector<8x16xf32>
    %18 = arith.addf %16, %17 : vector<8x16xf32>
    %19 = arith.negf %18 : vector<8x16xf32>
    %20 = math.exp %19 : vector<8x16xf32>
    %cst_10 = arith.constant 1.000000e+00 : f32
    %21 = vector.broadcast %cst_10 : f32 to vector<8x16xf32>
    %22 = arith.addf %21, %20 : vector<8x16xf32>
    %23 = arith.divf %21, %22 : vector<8x16xf32>
    %cst_11 = arith.constant dense<0.000000e+00> : vector<8x120xf32>
    %24 = tpu.matmul %23, %6, %cst_11 {dimension_numbers = #tpu.dot_dimension_numbers<[1], [0], [0], [1], [0, 0, 1, 1], [], []>} : vector<8x16xf32>, vector<16x120xf32>, vector<8x120xf32> -> vector<8x120xf32>
    %25 = vector.broadcast %2 : vector<1x120xf32> to vector<8x120xf32>
    %26 = arith.addf %24, %25 : vector<8x120xf32>
    %27 = arith.negf %26 : vector<8x120xf32>
    %28 = math.exp %27 : vector<8x120xf32>
    %cst_12 = arith.constant 1.000000e+00 : f32
    %29 = vector.broadcast %cst_12 : f32 to vector<8x120xf32>
    %30 = arith.addf %29, %28 : vector<8x120xf32>
    %31 = arith.divf %29, %30 : vector<8x120xf32>
    %cst_13 = arith.constant dense<0.000000e+00> : vector<8x84xf32>
    %32 = tpu.matmul %31, %7, %cst_13 {dimension_numbers = #tpu.dot_dimension_numbers<[1], [0], [0], [1], [0, 0, 1, 1], [], []>} : vector<8x120xf32>, vector<120x84xf32>, vector<8x84xf32> -> vector<8x84xf32>
    %33 = vector.broadcast %3 : vector<1x84xf32> to vector<8x84xf32>
    %34 = arith.addf %32, %33 : vector<8x84xf32>
    %35 = arith.negf %34 : vector<8x84xf32>
    %36 = math.exp %35 : vector<8x84xf32>
    %cst_14 = arith.constant 1.000000e+00 : f32
    %37 = vector.broadcast %cst_14 : f32 to vector<8x84xf32>
    %38 = arith.addf %37, %36 : vector<8x84xf32>
    %39 = arith.divf %37, %38 : vector<8x84xf32>
    %cst_15 = arith.constant dense<0.000000e+00> : vector<8x10xf32>
    %40 = tpu.matmul %39, %8, %cst_15 {dimension_numbers = #tpu.dot_dimension_numbers<[1], [0], [0], [1], [0, 0, 1, 1], [], []>} : vector<8x84xf32>, vector<84x10xf32>, vector<8x10xf32> -> vector<8x10xf32>
    %41 = vector.broadcast %4 : vector<1x10xf32> to vector<8x10xf32>
    %42 = arith.addf %40, %41 : vector<8x10xf32>
    %c0_16 = arith.constant 0 : index
    %c0_17 = arith.constant 0 : index
    %43 = vector.load %arg3[%c0_16, %c0_17] : memref<8x10xf32, #tpu.memory_space<vmem>>, vector<8x10xf32>
    tpu.vector_store %arg3[%c0_16, %c0_17], %42 {strides = array<i32>} : memref<8x10xf32, #tpu.memory_space<vmem>>, vector<8x10xf32>,
    return
  }
  func.func @transform_0(%arg0: i32) -> (i32, i32) {
    %c0_i32 = arith.constant 0 : i32
    %c0_i32_0 = arith.constant 0 : i32
    %c0_i32_1 = arith.constant 0 : i32
    return %c0_i32, %c0_i32_0 : i32, i32
  }
  func.func @transform_1(%arg0: i32) -> (i32, i32) {
    %c0_i32 = arith.constant 0 : i32
    %c0_i32_0 = arith.constant 0 : i32
    %c0_i32_1 = arith.constant 0 : i32
    return %c0_i32, %c0_i32_0 : i32, i32
  }
  func.func @transform_2(%arg0: i32) -> (i32, i32) {
    %c0_i32 = arith.constant 0 : i32
    %c0_i32_0 = arith.constant 0 : i32
    %c0_i32_1 = arith.constant 0 : i32
    return %c0_i32, %c0_i32_0 : i32, i32
  }
}

</mosaic_0001>

<bundles_post_ra>
// kernel: tpu_custom_call.1
= control target key start
LH: loop header
LB: loop body
LE: loop exit
PB: predicated region body
PF: predicated region fallthrough
CT: control target
= control target key end

     0   :  { %7 = vsyncpa [#allocation3], 0  ;;  %s378_s0 = inlined_call_operand.vmem [shape: f32[8,4], index: 0, kind: input, shape index: {}]   ;;  %s379_s1 = inlined_call_operand.hbm [shape: f32[240,128], index: 1, kind: input, shape index: {}]   ;;  %s380_s2 = inlined_call_operand.hbm [shape: f32[8,10], index: 2, kind: output, shape index: {}]  }
   0x1   :  { %8 = vsyncpa [#allocation4], 0  ;;  %s15_s11 = sshll.u32 %s379_s1, 4  ;;  %s353_s12 = smov [#allocation2]   ;;  %s16_s11 = int_to_ptr.hbm [resolvable:$true] %s15_s11 }
   0x2   :  { %s17_s13 = sshll.u32 %s353_s12, 4  ;;  %s354_s14 = smov 128   ;;  %s18_s13 = int_to_ptr.vmem [resolvable:$true] %s17_s13 }
   0x3   :  { %s355_s15 = smov 8  }
   0x4   :  { %23 = dma.hbm_to_vmem [thread:$0]  %s16_s11, 3840, %s18_s13, [#allocation3], %s354_s14, %s354_s14, %s355_s15  }
   0x5   :  { %349 = dma.done.wait [#allocation3], 3840  }
   0x6   :  { %350 = vsyncadd [#allocation3], 4294963456  ;;  %vm87_vm0 = vcmask 1045504   ;;  %v33_v0 = vld [vmem:[#allocation2 + $0x8] sm:$0x3f]  ;;  %vm83_vm5 = vcmask 48128  }
   0x7   :  { %v280_v1 = vld [vmem:[#allocation2] ss:$0 sm:$0xff]  ;;  %267 = vmatpush.msk.msra.mxu0 %vm87_vm0, %v33_v0  ;;  %v35_v15 = vld [vmem:[#allocation2 + $0x18] sm:$0xff]  ;;  %v34_v16 = vld [vmem:[#allocation2 + $0x10] sm:$0xff]  ;;  %vm131_vm9 = vcmask 130048   ;;  %vm175_vm14 = vcmask 982016  }
   0x8   :  { %v266_v2 = vmul.f32 -1.442695, %v280_v1  ;;  %149 = vmatpush.msra.mxu1 %v35_v15  ;;  %v281_v17 = vld [vmem:[#allocation2 + $0x1] ss:$0 sm:$0xff]  ;;  %v50_v33 = vld [vmem:[#allocation2 + $0x90] sm:$0xff]  ;;  %v49_v34 = vld [vmem:[#allocation2 + $0x88] sm:$0xff] }
   0x9   :  { %180 = vmatpush.msra.mxu2 %v50_v33  ;;  %v48_v35 = vld [vmem:[#allocation2 + $0x80] sm:$0xff]  ;;  %v47_v36 = vld [vmem:[#allocation2 + $0x78] sm:$0xff]  ;;  %v46_v37 = vld [vmem:[#allocation2 + $0x70] sm:$0xff]  ;;  %vm223_vm0 = vcmask 1043456   ;;  %s356_s0 = smov [#allocation5]   ;;  %s256_s18 = sshll.u32 %s380_s2, 4  ;;  %s257_s18 = int_to_ptr.hbm [resolvable:$true] %s256_s18 }
   0xa   :  { %285 = vpow2.f32 %v266_v2  ;;  %150 = vmatpush.msra.mxu1 %v34_v16  ;;  %v45_v38 = vld [vmem:[#allocation2 + $0x68] sm:$0xff]  ;;  %v44_v39 = vld [vmem:[#allocation2 + $0x60] sm:$0xff]  ;;  %v43_v40 = vld [vmem:[#allocation2 + $0x58] sm:$0xff]  ;;  %s254_s1 = sshll.u32 %s356_s0, 4  ;;  %s255_s1 = int_to_ptr.vmem [resolvable:$true] %s254_s1 }
   0xb   :  { %181 = vmatpush.msra.mxu2 %v49_v34  ;;  %v42_v41 = vld [vmem:[#allocation2 + $0x50] sm:$0xff]  ;;  %v41_v42 = vld [vmem:[#allocation2 + $0x48] sm:$0xff]  ;;  %v40_v43 = vld [vmem:[#allocation2 + $0x40] sm:$0xff] }
   0xc   :  { %v39_v44 = vld [vmem:[#allocation2 + $0x38] sm:$0xff]  ;;  %v38_v45 = vld [vmem:[#allocation2 + $0x30] sm:$0xff]  ;;  %v37_v46 = vld [vmem:[#allocation2 + $0x28] sm:$0xff] }
   0xd   :  { %182 = vmatpush.msra.mxu2 %v48_v35  ;;  %v36_v47 = vld [vmem:[#allocation2 + $0x20] sm:$0xff]  ;;  %v61_v0 = vld [vmem:[#allocation2 + $0xe8] sm:$0xf]  ;;  %v59_v2 = vld [vmem:[#allocation2 + $0xd8] sm:$0xff] }
   0xe   :  { %v282_v48 = vld [vmem:[#allocation2 + $0x2] ss:$0 sm:$0xff]  ;;  %274 = vmatpush.msk.msra.mxu3 %vm223_vm0, %v61_v0 }
   0xf   :  { %183 = vmatpush.msra.mxu2 %v47_v36  ;;  %v60_v1 = vld [vmem:[#allocation2 + $0xe0] sm:$0xff] }
  0x10   :  { %v286_v3 = vpop.eup %285  ;;  %233 = vmatpush.msra.mxu3 %v60_v1 }
  0x11   :  { %v66_v4 = vadd.f32 1.0, %v286_v3  ;;  %184 = vmatpush.msra.mxu2 %v46_v37  ;;  %v58_v3 = vld [vmem:[#allocation2 + $0xd0] sm:$0xff] }
  0x12   :  { %234 = vmatpush.msra.mxu3 %v59_v2 }
  0x13   :  { %287 = vrcp.f32 %v66_v4  ;;  %v78_v7 = vand.u32 2147483648, %v66_v4  ;;  %vm72_vm1 = vweird.f32 %v66_v4  ;;  %v76_v9 = vand.u32 2147483647, %v66_v4  ;;  %185 = vmatpush.msra.mxu2 %v45_v38 }
  0x14   :  { %235 = vmatpush.msra.mxu3 %v58_v3 }
  0x15   :  { %v79_v11 = vor.u32 1.1754944e-38, %v78_v7  ;;  %vm77_vm4 = vcmp.eq.f32.partialorder %v76_v9, 8.507059e+37  ;;  %186 = vmatpush.msra.mxu2 %v44_v39  ;;  %v54_v7 = vld [vmem:[#allocation2 + $0xb0] sm:$0xff]  ;;  %v52_v9 = vld [vmem:[#allocation2 + $0xa0] sm:$0xff] }
  0x17   :  { %187 = vmatpush.msra.mxu2 %v43_v40 }
  0x19   :  { %v288_v5 = vpop.eup %287  ;;  %188 = vmatpush.msra.mxu2 %v42_v41 }
  0x1a   :  { %v68_v6 = vmul.f32 %v288_v5, %v66_v4  ;;  %vm73_vm2 = vweird.f32 %v288_v5  ;;  %v57_v4 = vld [vmem:[#allocation2 + $0xc8] sm:$0xff] }
  0x1b   :  { %vm74_vm3 = vmor %vm72_vm1, %vm73_vm2  ;;  %189 = vmatpush.msra.mxu2 %v41_v42  ;;  %236 = vmatpush.msra.mxu3 %v57_v4 }
  0x1c   :  { %v69_v8 = vsub.f32 1.0, %v68_v6  ;;  %v55_v6 = vld [vmem:[#allocation2 + $0xb8] sm:$0xff] }
  0x1d   :  { %190 = vmatpush.msra.mxu2 %v40_v43 }
  0x1e   :  { %v70_v10 = vmul.f32 %v288_v5, %v69_v8  ;;  %v53_v8 = vld [vmem:[#allocation2 + $0xa8] sm:$0xff] }
  0x1f   :  { %191 = vmatpush.msra.mxu2 %v39_v44 }
  0x20   :  { %v71_v12 = vadd.f32 %v288_v5, %v70_v10  ;;  %v51_v10 = vld [vmem:[#allocation2 + $0x98] sm:$0xff] }
  0x21   :  { %192 = vmatpush.msra.mxu2 %v38_v45 }
  0x22   :  { %v75_v13 = vsel %vm74_vm3, %v288_v5, %v71_v12  ;;  %v56_v5 = vld [vmem:[#allocation2 + $0xc0] sm:$0xff] }
  0x23   :  { %v80_v14 = vsel %vm77_vm4, %v79_v11, %v75_v13  ;;  %193 = vmatpush.msra.mxu2 %v37_v46  ;;  %237 = vmatpush.msra.mxu3 %v56_v5  ;;  %v283_v11 = vld [vmem:[#allocation2 + $0x3] ss:$0 sm:$0xff]  ;;  %vm219_vm4 = vcmask 687104  }
  0x24   :  { %268 = vmatmul.msk.f32.vlgmr.msra.gmra.mxu0 %vm83_vm5, %v80_v14 }
  0x25   :  { %194 = vmatpush.msra.mxu2 %v36_v47  ;;  %238 = vmatpush.msra.mxu3 %v55_v6 }
  0x27   :  { %239 = vmatpush.msra.mxu3 %v54_v7 }
  0x29   :  { %240 = vmatpush.msra.mxu3 %v53_v8 }
  0x2b   :  { %241 = vmatpush.msra.mxu3 %v52_v9 }
  0x2d   :  { %242 = vmatpush.msra.mxu3 %v51_v10 }
  0xa1   :  { %v108_v18 = vpop.f32.mrf.mxu0 }
  0xa2   :  { %v109_v19 = vadd.f32 %v281_v17, %v108_v18 }
  0xa4   :  { %v269_v20 = vmul.f32 -1.442695, %v109_v19 }
  0xa6   :  { %289 = vpow2.f32 %v269_v20 }
  0xac   :  { %v290_v21 = vpop.eup %289 }
  0xad   :  { %v114_v22 = vadd.f32 1.0, %v290_v21 }
  0xaf   :  { %291 = vrcp.f32 %v114_v22  ;;  %v126_v26 = vand.u32 2147483648, %v114_v22  ;;  %v124_v28 = vand.u32 2147483647, %v114_v22  ;;  %vm120_vm7 = vweird.f32 %v114_v22 }
  0xb1   :  { %v127_v30 = vor.u32 1.1754944e-38, %v126_v26  ;;  %vm125_vm10 = vcmp.eq.f32.partialorder %v124_v28, 8.507059e+37 }
  0xb5   :  { %v292_v23 = vpop.eup %291 }
  0xb6   :  { %v116_v24 = vmul.f32 %v292_v23, %v114_v22  ;;  %vm121_vm6 = vweird.f32 %v292_v23 }
  0xb7   :  { %vm122_vm8 = vmor %vm120_vm7, %vm121_vm6  ;;  %vm247_vm6 = vcmask 80896  }
  0xb8   :  { %v117_v25 = vsub.f32 1.0, %v116_v24 }
  0xba   :  { %v118_v27 = vmul.f32 %v292_v23, %v117_v25 }
  0xbc   :  { %v119_v29 = vadd.f32 %v292_v23, %v118_v27  ;;  %v284_v27 = vld [vmem:[#allocation2 + $0x4] ss:$0 sm:$0xff] }
  0xbe   :  { %v123_v31 = vsel %vm122_vm8, %v292_v23, %v119_v29 }
  0xbf   :  { %v128_v32 = vsel %vm125_vm10, %v127_v30, %v123_v31 }
  0xc0   :  { %270 = vmatmul.msk.f32.vlgmr.msra.gmra.mxu1 %vm131_vm9, %v128_v32 }
 0x13d   :  { %v152_v49 = vpop.f32.mrf.mxu1 }
 0x13e   :  { %v153_v50 = vadd.f32 %v282_v48, %v152_v49 }
 0x140   :  { %v271_v51 = vmul.f32 -1.442695, %v153_v50 }
 0x142   :  { %293 = vpow2.f32 %v271_v51 }
 0x148   :  { %v294_v52 = vpop.eup %293 }
 0x149   :  { %v158_v53 = vadd.f32 1.0, %v294_v52 }
 0x14b   :  { %295 = vrcp.f32 %v158_v53  ;;  %v170_v57 = vand.u32 2147483648, %v158_v53  ;;  %v168_v59 = vand.u32 2147483647, %v158_v53  ;;  %vm164_vm12 = vweird.f32 %v158_v53 }
 0x14d   :  { %v171_v61 = vor.u32 1.1754944e-38, %v170_v57  ;;  %vm169_vm15 = vcmp.eq.f32.partialorder %v168_v59, 8.507059e+37 }
 0x151   :  { %v296_v54 = vpop.eup %295 }
 0x152   :  { %v160_v55 = vmul.f32 %v296_v54, %v158_v53  ;;  %vm165_vm11 = vweird.f32 %v296_v54 }
 0x153   :  { %vm166_vm13 = vmor %vm164_vm12, %vm165_vm11 }
 0x154   :  { %v161_v56 = vsub.f32 1.0, %v160_v55 }
 0x156   :  { %v162_v58 = vmul.f32 %v296_v54, %v161_v56 }
 0x158   :  { %v163_v60 = vadd.f32 %v296_v54, %v162_v58 }
 0x15a   :  { %v167_v62 = vsel %vm166_vm13, %v296_v54, %v163_v60 }
 0x15b   :  { %v172_v63 = vsel %vm169_vm15, %v171_v61, %v167_v62 }
 0x15c   :  { %272 = vmatmul.msk.f32.vlgmr.msra.gmra.mxu2 %vm175_vm14, %v172_v63 }
 0x1df   :  { %v196_v12 = vpop.f32.mrf.mxu2 }
 0x1e0   :  { %v197_v13 = vadd.f32 %v283_v11, %v196_v12 }
 0x1e2   :  { %v273_v14 = vmul.f32 -1.442695, %v197_v13 }
 0x1e4   :  { %297 = vpow2.f32 %v273_v14 }
 0x1ea   :  { %v298_v15 = vpop.eup %297 }
 0x1eb   :  { %v202_v16 = vadd.f32 1.0, %v298_v15 }
 0x1ed   :  { %299 = vrcp.f32 %v202_v16  ;;  %v214_v20 = vand.u32 2147483648, %v202_v16  ;;  %v212_v22 = vand.u32 2147483647, %v202_v16  ;;  %vm208_vm2 = vweird.f32 %v202_v16 }
 0x1ef   :  { %v215_v24 = vor.u32 1.1754944e-38, %v214_v20  ;;  %vm213_vm5 = vcmp.eq.f32.partialorder %v212_v22, 8.507059e+37 }
 0x1f3   :  { %v300_v17 = vpop.eup %299 }
 0x1f4   :  { %v204_v18 = vmul.f32 %v300_v17, %v202_v16  ;;  %vm209_vm1 = vweird.f32 %v300_v17 }
 0x1f5   :  { %vm210_vm3 = vmor %vm208_vm2, %vm209_vm1 }
 0x1f6   :  { %v205_v19 = vsub.f32 1.0, %v204_v18 }
 0x1f8   :  { %v206_v21 = vmul.f32 %v300_v17, %v205_v19 }
 0x1fa   :  { %v207_v23 = vadd.f32 %v300_v17, %v206_v21 }
 0x1fc   :  { %v211_v25 = vsel %vm210_vm3, %v300_v17, %v207_v23 }
 0x1fd   :  { %v216_v26 = vsel %vm213_vm5, %v215_v24, %v211_v25 }
 0x1fe   :  { %275 = vmatmul.msk.f32.vlgmr.msra.gmra.mxu3 %vm219_vm4, %v216_v26 }
 0x281   :  { %v244_v28 = vpop.f32.mrf.mxu3 }
 0x282   :  { %v245_v29 = vadd.f32 %v284_v27, %v244_v28 }
 0x284   :  { %248 = vst.msk [vmem:[#allocation5] sm:$0xff] %vm247_vm6, %v245_v29 }
 0x285   :  { %259 = dma.vmem_to_hbm [thread:$0]  %s255_s1, 128, %s257_s18, [#allocation4]  }
 0x286   :  { %351 = dma.done.wait [#allocation4], 128  }
 0x287   :  { %352 = vsyncadd [#allocation4], 4294967168 }
 0x288   :  { %264 = vsyncpa [#allocation3], 1 }
 0x289   :  { %265 = vsyncpa [#allocation4], 1 }

</bundles_post_ra>
